<compile_context>
chip_gen: v5e
topology: v5e:2x2
jax: 0.10.0
libtpu: 0.0.40
codegen_flags: <defaults>
</compile_context>

<pallas_src>
import functools

import jax
import jax.numpy as jnp
from jax.experimental import pallas as pl
from jax.experimental.pallas import tpu as pltpu

QMAX = 255.0                     # 2**num_bits - 1, num_bits = 8
TARGET_BLOCK_ELEMS = 1 << 20     # ~4 MiB of f32 per block
_LANE_CHOICES = (2048, 1024, 512, 256, 128)


def _cdiv(a, b):
    return -(-a // b)


def _choose_layout(n, block_elems):
    """Pick (cols, rows, pad, blk_rows, nblk) for a flattened tensor of n elements."""
    pad = 0
    cols = 128
    for c in _LANE_CHOICES:
        if n % c == 0:
            cols = c
            break
    else:
        pad = (-n) % 128          # fallback: tiny zero pad (n not a multiple of 128)
        cols = 128
    rows = (n + pad) // cols
    # Rows per block: multiple of 32 (covers f32/bf16/int8 sublane packing); a
    # single block covering all rows is always layout-legal (block == full dim).
    target_rows = max(32, (block_elems // cols) // 32 * 32)
    blk_rows = rows if rows <= target_rows else target_rows
    nblk = _cdiv(rows, blk_rows)
    return cols, rows, pad, blk_rows, nblk


# ----------------------------- Pallas kernels -----------------------------

def _make_minmax_kernel(blk_rows, cols, n_valid, needs_mask):
    """Per-block partial min/max of x, written to a (1, 1, cols) output row.

    Only the last grid block can contain invalid elements (ragged row tail and/or
    the zero pad used when n % 128 != 0); it is masked by flat element index so the
    TRUE (unclamped) min/max of x are produced (needed for the derived qo stats).
    """

    def _store(pmin_ref, pmax_ref, xmin_blk, xmax_blk):
        pmin_ref[...] = jnp.min(xmin_blk, axis=0, keepdims=True).reshape(pmin_ref.shape)
        pmax_ref[...] = jnp.max(xmax_blk, axis=0, keepdims=True).reshape(pmax_ref.shape)

    def kernel(x_ref, pmin_ref, pmax_ref):
        x = x_ref[...].astype(jnp.float32)
        if not needs_mask:
            _store(pmin_ref, pmax_ref, x, x)
        else:
            i = pl.program_id(0)
            last = pl.num_programs(0) - 1

            @pl.when(i < last)
            def _():
                _store(pmin_ref, pmax_ref, x, x)

            @pl.when(i == last)
            def _():
                # Flat element index of every lane in this block (n < 2**31 assumed).
                row = jax.lax.broadcasted_iota(jnp.int32, (blk_rows, cols), 0)
                col = jax.lax.broadcasted_iota(jnp.int32, (blk_rows, cols), 1)
                idx = (i * blk_rows + row) * cols + col
                valid = idx < n_valid
                _store(pmin_ref, pmax_ref,
                       jnp.where(valid, x, jnp.inf),
                       jnp.where(valid, x, -jnp.inf))

    return kernel


def _fq_sigmoid_fq_kernel(q_ref, x_ref, out_ref):
    """out = fake_quant(sigmoid(fake_quant(x; qi)); qo), fully fused.

    q_ref (SMEM, f32[8]) =
      [inv_scale_i, zp_i, scale_i, scale_i*zp_i,
       inv_scale_o, zp_o, scale_o, scale_o*zp_o]
    """
    inv_s_i, zp_i, s_i, szp_i = q_ref[0], q_ref[1], q_ref[2], q_ref[3]
    inv_s_o, zp_o, s_o, szp_o = q_ref[4], q_ref[5], q_ref[6], q_ref[7]

    x = x_ref[...].astype(jnp.float32)
    # quantize_tensor: clamp(0, 255) then round (half-to-even, like torch).
    qx = jnp.round(jnp.clip(x * inv_s_i + zp_i, 0.0, QMAX))
    # dequantize with folded constant; compute -x_fq directly (saves a negate).
    neg_xfq = szp_i - qx * s_i
    y = 1.0 / (1.0 + jnp.exp(neg_xfq))              # sigmoid (exp on the EUP)
    qy = jnp.round(jnp.clip(y * inv_s_o + zp_o, 0.0, QMAX))
    out_ref[...] = (qy * s_o - szp_o).astype(out_ref.dtype)


# ----------------------------- glue (plain JAX) -----------------------------

def _calc_scale_zp(min_val, max_val):
    # calcScaleZeroPoint with qmin=0, qmax=255.
    scale = (max_val - min_val) / QMAX
    zp = jnp.round(jnp.clip(QMAX - max_val / scale, 0.0, QMAX))
    return scale, zp


def _fq(v, scale, inv_scale, zp):
    # Fake-quantize, written in the exact operation order used by the kernel
    # (multiply by 1/scale; dequant as q*scale - scale*zp) so the JAX reference and
    # the Pallas kernel are directly comparable.  vs. the PyTorch module (which
    # divides by scale) this can differ by one quantization bin at exact rounding
    # boundaries.
    q = jnp.round(jnp.clip(zp + v * inv_scale, 0.0, QMAX))
    return q * scale - scale * zp


@functools.partial(jax.jit, static_argnames=("block_elems",))
def qsigmoid_forward(x, *, block_elems=TARGET_BLOCK_ELEMS):
    orig_shape = x.shape
    orig_dtype = x.dtype
    n = x.size
    itemsize = jnp.dtype(orig_dtype).itemsize

    cols, rows, pad, blk_rows, nblk = _choose_layout(n, block_elems)
    needs_mask = (pad > 0) or (rows % blk_rows != 0)

    flat = x.reshape(-1)
    if pad:
        # Fallback only when n is not a multiple of 128: zero pad (one extra copy).
        # The common case has no pad and no output slice -> no full-tensor copies.
        flat = jnp.pad(flat, (0, pad))
    x2d = flat.reshape(rows, cols)

    blk_spec = pl.BlockSpec((blk_rows, cols), lambda i: (i, 0))
    part_spec = pl.BlockSpec((1, 1, cols), lambda i: (i, 0, 0))
    part_shape = jax.ShapeDtypeStruct((nblk, 1, cols), jnp.float32)
    cparams = pltpu.CompilerParams(dimension_semantics=("parallel",),
                                   vmem_limit_bytes=32 * 1024 * 1024)

    # ---- Pass 1: per-block partial min/max of x (parallel, no carried state) ----
    pmin, pmax = pl.pallas_call(
        _make_minmax_kernel(blk_rows, cols, n, needs_mask),
        grid=(nblk,),
        in_specs=[blk_spec],
        out_specs=(part_spec, part_spec),
        out_shape=(part_shape, part_shape),
        compiler_params=cparams,
        cost_estimate=pl.CostEstimate(
            flops=2 * rows * cols, transcendentals=0,
            bytes_accessed=rows * cols * itemsize + 2 * nblk * cols * 4),
    )(x2d)

    xmin = jnp.min(pmin)        # true (unclamped) min(x)
    xmax = jnp.max(pmax)        # true (unclamped) max(x)

    # qi statistics (QParam.update_statistic clamps: max >= 0, min <= 0).
    min_i = jnp.minimum(xmin, 0.0)
    max_i = jnp.maximum(xmax, 0.0)
    scale_i, zp_i = _calc_scale_zp(min_i, max_i)
    inv_scale_i = 1.0 / scale_i   # all-zero x gives scale 0 -> NaN (same as torch)

    # qo statistics without another tensor pass: fq (scale >= 0) and sigmoid are
    # monotone non-decreasing, so max(y) = sigmoid(fq(true max(x); qi)); y > 0 so
    # the clamped min is exactly 0.
    y_max = 1.0 / (1.0 + jnp.exp(-_fq(xmax, scale_i, inv_scale_i, zp_i)))
    max_o = jnp.maximum(y_max, 0.0)
    min_o = jnp.float32(0.0)
    scale_o, zp_o = _calc_scale_zp(min_o, max_o)
    inv_scale_o = 1.0 / scale_o

    q = jnp.stack([inv_scale_i, zp_i, scale_i, scale_i * zp_i,
                   inv_scale_o, zp_o, scale_o, scale_o * zp_o]).astype(jnp.float32)

    # ---- Pass 2 (fused): fq(x; qi) -> sigmoid -> fq(.; qo) ----------------------
    out2d = pl.pallas_call(
        _fq_sigmoid_fq_kernel,
        grid=(nblk,),
        in_specs=[pl.BlockSpec(memory_space=pltpu.SMEM), blk_spec],
        out_specs=blk_spec,
        out_shape=jax.ShapeDtypeStruct((rows, cols), orig_dtype),
        compiler_params=cparams,
        cost_estimate=pl.CostEstimate(
            flops=16 * rows * cols, transcendentals=2 * rows * cols,
            bytes_accessed=2 * rows * cols * itemsize),
    )(q, x2d)

    if pad:
        return out2d.reshape(-1)[:n].reshape(orig_shape)
    return out2d.reshape(orig_shape)


# ------------------- pure-JAX reference (full reductions) -------------------

def _ref_forward(x):
    """Reference with full reductions (validates the monotone-qo shortcut).

    Returns (out, qo_scale)."""
    xf = x.astype(jnp.float32)
    min_i = jnp.minimum(jnp.min(xf), 0.0)
    max_i = jnp.maximum(jnp.max(xf), 0.0)
    scale_i, zp_i = _calc_scale_zp(min_i, max_i)
    x_fq = _fq(xf, scale_i, 1.0 / scale_i, zp_i)
    y = 1.0 / (1.0 + jnp.exp(-x_fq))
    min_o = jnp.minimum(jnp.min(y), 0.0)
    max_o = jnp.maximum(jnp.max(y), 0.0)
    scale_o, zp_o = _calc_scale_zp(min_o, max_o)
    out = _fq(y, scale_o, 1.0 / scale_o, zp_o)
    return out.astype(x.dtype), scale_o


def _check(out, ref, qo_scale, n):
    # Outputs lie on the qo quantization grid; the Pallas kernel and the XLA
    # reference may legitimately disagree by exactly one grid step when an
    # intermediate lands on a round-half-to-even boundary (different-but-valid
    # transcendental lowerings).  Require: essentially all elements identical and
    # none further than one quantization step apart.
    diff = jnp.abs(out.astype(jnp.float32) - ref.astype(jnp.float32))
    mismatches = int(jnp.sum(diff > 1e-6))
    max_diff = float(jnp.max(diff))
    step = float(qo_scale)
    assert mismatches <= max(3, n // 500), f"{mismatches} mismatches out of {n}"
    assert max_diff <= step * 1.001 + 1e-6, f"max diff {max_diff} > one bin {step}"


if __name__ == "__main__":
    # TODO(synk): freeze()/quantize_inference (uint8 LUT + interp) is a separate
    # integer inference path, not part of forward(); not implemented here.
    key = jax.random.PRNGKey(0)
    k1, k2, k3 = jax.random.split(key, 3)

    # Primary shape implied by the module (conv-style activations); n % 128 == 0
    # -> copy-free path, single block.
    x_main = jax.random.normal(k1, (2, 4, 16, 16), dtype=jnp.float32) * 3.0
    out = jax.block_until_ready(qsigmoid_forward(x_main))
    ref, qo_scale = _ref_forward(x_main)
    assert out.shape == x_main.shape and out.dtype == x_main.dtype
    _check(out, ref, qo_scale, x_main.size)

    # Ragged size (n % 128 != 0): exercises the zero-pad fallback + index mask.
    x_ragged = jax.random.normal(k2, (3, 5, 7), dtype=jnp.float32) * 2.0
    out = jax.block_until_ready(qsigmoid_forward(x_ragged))
    ref, qo_scale = _ref_forward(x_ragged)
    assert out.shape == x_ragged.shape and out.dtype == x_ragged.dtype
    _check(out, ref, qo_scale, x_ragged.size)

    # Multi-block grid with a ragged row tail (tiny block size forced so the
    # partial-trailing-block masking path is covered at a small shape).
    x_multi = jax.random.normal(k3, (37, 128), dtype=jnp.float32)
    out = jax.block_until_ready(qsigmoid_forward(x_multi, block_elems=2048))
    ref, qo_scale = _ref_forward(x_multi)
    assert out.shape == x_multi.shape and out.dtype == x_multi.dtype
    _check(out, ref, qo_scale, x_multi.size)

    print("KERNEL_OK")
</pallas_src>

<mosaic_0001>
module attributes {stable_mosaic.version = 11 : i64} {
  func.func @kernel(%arg0: i32, %arg1: memref<1x2048xf32, #tpu.memory_space<vmem>>, %arg2: memref<1x1x2048xf32, #tpu.memory_space<vmem>>, %arg3: memref<1x1x2048xf32, #tpu.memory_space<vmem>>) attributes {dimension_semantics = [#tpu.dimension_semantics<parallel>], iteration_bounds = array<i64: 1>, scalar_prefetch = 0 : i64, scratch_operands = 0 : i64, tpu.core_type = #tpu.core_type<tc>, window_params = [{transform_indices = @transform_0, window_bounds = array<i64: 1, 2048>}, {transform_indices = @transform_1, window_bounds = array<i64: 1, 1, 2048>}, {transform_indices = @transform_2, window_bounds = array<i64: 1, 1, 2048>}]} {
    %c0 = arith.constant 0 : index
    %c0_0 = arith.constant 0 : index
    %0 = vector.load %arg1[%c0, %c0_0] : memref<1x2048xf32, #tpu.memory_space<vmem>>, vector<1x2048xf32>
    %cst = arith.constant dense<0x7F800000> : vector<2048xf32>
    %1 = vector.multi_reduction <minimumf>, %0, %cst [0] : vector<1x2048xf32> to vector<2048xf32>
    %2 = vector.shape_cast %1 : vector<2048xf32> to vector<1x2048xf32>
    %3 = vector.shape_cast %2 : vector<1x2048xf32> to vector<1x1x2048xf32>
    %c0_1 = arith.constant 0 : index
    %c0_2 = arith.constant 0 : index
    %c0_3 = arith.constant 0 : index
    %4 = vector.load %arg2[%c0_1, %c0_2, %c0_3] : memref<1x1x2048xf32, #tpu.memory_space<vmem>>, vector<1x1x2048xf32>
    tpu.vector_store %arg2[%c0_1, %c0_2, %c0_3], %3 {strides = array<i32>} : memref<1x1x2048xf32, #tpu.memory_space<vmem>>, vector<1x1x2048xf32>,
    %cst_4 = arith.constant dense<0xFF800000> : vector<2048xf32>
    %5 = vector.multi_reduction <maximumf>, %0, %cst_4 [0] : vector<1x2048xf32> to vector<2048xf32>
    %6 = vector.shape_cast %5 : vector<2048xf32> to vector<1x2048xf32>
    %7 = vector.shape_cast %6 : vector<1x2048xf32> to vector<1x1x2048xf32>
    %c0_5 = arith.constant 0 : index
    %c0_6 = arith.constant 0 : index
    %c0_7 = arith.constant 0 : index
    %8 = vector.load %arg3[%c0_5, %c0_6, %c0_7] : memref<1x1x2048xf32, #tpu.memory_space<vmem>>, vector<1x1x2048xf32>
    tpu.vector_store %arg3[%c0_5, %c0_6, %c0_7], %7 {strides = array<i32>} : memref<1x1x2048xf32, #tpu.memory_space<vmem>>, vector<1x1x2048xf32>,
    return
  }
  func.func @transform_0(%arg0: i32) -> (i32, i32) {
    %c0_i32 = arith.constant 0 : i32
    %c0_i32_0 = arith.constant 0 : i32
    return %arg0, %c0_i32 : i32, i32
  }
  func.func @transform_1(%arg0: i32) -> (i32, i32, i32) {
    %c0_i32 = arith.constant 0 : i32
    %c0_i32_0 = arith.constant 0 : i32
    %c0_i32_1 = arith.constant 0 : i32
    return %arg0, %c0_i32, %c0_i32_0 : i32, i32, i32
  }
  func.func @transform_2(%arg0: i32) -> (i32, i32, i32) {
    %c0_i32 = arith.constant 0 : i32
    %c0_i32_0 = arith.constant 0 : i32
    %c0_i32_1 = arith.constant 0 : i32
    return %arg0, %c0_i32, %c0_i32_0 : i32, i32, i32
  }
}

module attributes {stable_mosaic.version = 11 : i64} {
  func.func @_fq_sigmoid_fq_kernel(%arg0: i32, %arg1: memref<8xf32, #tpu.memory_space<smem>>, %arg2: memref<1x2048xf32, #tpu.memory_space<vmem>>, %arg3: memref<1x2048xf32, #tpu.memory_space<vmem>>) attributes {dimension_semantics = [#tpu.dimension_semantics<parallel>], iteration_bounds = array<i64: 1>, scalar_prefetch = 0 : i64, scratch_operands = 0 : i64, tpu.core_type = #tpu.core_type<tc>, window_params = [{transform_indices = @transform_0, window_bounds = array<i64: 8>}, {transform_indices = @transform_1, window_bounds = array<i64: 1, 2048>}, {transform_indices = @transform_2, window_bounds = array<i64: 1, 2048>}]} {
    %c0 = arith.constant 0 : index
    %0 = memref.load %arg1[%c0] : memref<8xf32, #tpu.memory_space<smem>>
    %c1 = arith.constant 1 : index
    %1 = memref.load %arg1[%c1] : memref<8xf32, #tpu.memory_space<smem>>
    %c2 = arith.constant 2 : index
    %2 = memref.load %arg1[%c2] : memref<8xf32, #tpu.memory_space<smem>>
    %c3 = arith.constant 3 : index
    %3 = memref.load %arg1[%c3] : memref<8xf32, #tpu.memory_space<smem>>
    %c4 = arith.constant 4 : index
    %4 = memref.load %arg1[%c4] : memref<8xf32, #tpu.memory_space<smem>>
    %c5 = arith.constant 5 : index
    %5 = memref.load %arg1[%c5] : memref<8xf32, #tpu.memory_space<smem>>
    %c6 = arith.constant 6 : index
    %6 = memref.load %arg1[%c6] : memref<8xf32, #tpu.memory_space<smem>>
    %c7 = arith.constant 7 : index
    %7 = memref.load %arg1[%c7] : memref<8xf32, #tpu.memory_space<smem>>
    %c0_0 = arith.constant 0 : index
    %c0_1 = arith.constant 0 : index
    %8 = vector.load %arg2[%c0_0, %c0_1] : memref<1x2048xf32, #tpu.memory_space<vmem>>, vector<1x2048xf32>
    %9 = vector.broadcast %0 : f32 to vector<1x2048xf32>
    %10 = arith.mulf %8, %9 : vector<1x2048xf32>
    %11 = vector.broadcast %1 : f32 to vector<1x2048xf32>
    %12 = arith.addf %10, %11 : vector<1x2048xf32>
    %cst = arith.constant 0.000000e+00 : f32
    %cst_2 = arith.constant 2.550000e+02 : f32
    %13 = vector.broadcast %cst : f32 to vector<1x2048xf32>
    %14 = arith.maximumf %13, %12 : vector<1x2048xf32>
    %15 = vector.broadcast %cst_2 : f32 to vector<1x2048xf32>
    %16 = arith.minimumf %15, %14 : vector<1x2048xf32>
    %17 = math.roundeven %16 : vector<1x2048xf32>
    %18 = vector.broadcast %2 : f32 to vector<1x2048xf32>
    %19 = arith.mulf %17, %18 : vector<1x2048xf32>
    %20 = vector.broadcast %3 : f32 to vector<1x2048xf32>
    %21 = arith.subf %20, %19 : vector<1x2048xf32>
    %22 = math.exp %21 : vector<1x2048xf32>
    %cst_3 = arith.constant 1.000000e+00 : f32
    %23 = vector.broadcast %cst_3 : f32 to vector<1x2048xf32>
    %24 = arith.addf %23, %22 : vector<1x2048xf32>
    %cst_4 = arith.constant 1.000000e+00 : f32
    %25 = vector.broadcast %cst_4 : f32 to vector<1x2048xf32>
    %26 = arith.divf %25, %24 : vector<1x2048xf32>
    %27 = vector.broadcast %4 : f32 to vector<1x2048xf32>
    %28 = arith.mulf %26, %27 : vector<1x2048xf32>
    %29 = vector.broadcast %5 : f32 to vector<1x2048xf32>
    %30 = arith.addf %28, %29 : vector<1x2048xf32>
    %cst_5 = arith.constant 0.000000e+00 : f32
    %cst_6 = arith.constant 2.550000e+02 : f32
    %31 = vector.broadcast %cst_5 : f32 to vector<1x2048xf32>
    %32 = arith.maximumf %31, %30 : vector<1x2048xf32>
    %33 = vector.broadcast %cst_6 : f32 to vector<1x2048xf32>
    %34 = arith.minimumf %33, %32 : vector<1x2048xf32>
    %35 = math.roundeven %34 : vector<1x2048xf32>
    %36 = vector.broadcast %6 : f32 to vector<1x2048xf32>
    %37 = arith.mulf %35, %36 : vector<1x2048xf32>
    %38 = vector.broadcast %7 : f32 to vector<1x2048xf32>
    %39 = arith.subf %37, %38 : vector<1x2048xf32>
    %c0_7 = arith.constant 0 : index
    %c0_8 = arith.constant 0 : index
    %40 = vector.load %arg3[%c0_7, %c0_8] : memref<1x2048xf32, #tpu.memory_space<vmem>>, vector<1x2048xf32>
    tpu.vector_store %arg3[%c0_7, %c0_8], %39 {strides = array<i32>} : memref<1x2048xf32, #tpu.memory_space<vmem>>, vector<1x2048xf32>,
    return
  }
  func.func @transform_0(%arg0: i32) -> i32 {
    %c0_i32 = arith.constant 0 : i32
    %c0_i32_0 = arith.constant 0 : i32
    return %c0_i32 : i32
  }
  func.func @transform_1(%arg0: i32) -> (i32, i32) {
    %c0_i32 = arith.constant 0 : i32
    %c0_i32_0 = arith.constant 0 : i32
    return %arg0, %c0_i32 : i32, i32
  }
  func.func @transform_2(%arg0: i32) -> (i32, i32) {
    %c0_i32 = arith.constant 0 : i32
    %c0_i32_0 = arith.constant 0 : i32
    return %arg0, %c0_i32 : i32, i32
  }
}

</mosaic_0001>

<bundles_post_ra>
// kernel: qsigmoid_forward.2
= control target key start
LH: loop header
LB: loop body
LE: loop exit
PB: predicated region body
PF: predicated region fallthrough
CT: control target
= control target key end

     0   :  { %s57_s0 = inlined_call_operand.vmem [shape: f32[1,2048], index: 0, kind: input, shape index: {}]   ;;  %s58_s1 = inlined_call_operand.vmem [shape: f32[1,1,2048], index: 1, kind: output, shape index: {0}]   ;;  %s59_s2 = inlined_call_operand.vmem [shape: f32[1,1,2048], index: 2, kind: output, shape index: {1}]  }
   0x1   :  { %v10_v0 = vld [vmem:[%s57_s0] sm:$0xff]  ;;  %v11_v1 = vld [vmem:[%s57_s0 + $0x8] sm:$0xff] }
   0x2   :  { %12 = vst [vmem:[%s58_s1] sm:$0xff] %v10_v0 }
   0x3   :  { %13 = vst [vmem:[%s58_s1 + $0x8] sm:$0xff] %v11_v1 }
   0x4   :  { %14 = vst [vmem:[%s59_s2] sm:$0xff] %v10_v0 }
   0x5   :  { %15 = vst [vmem:[%s59_s2 + $0x8] sm:$0xff] %v11_v1 }

// kernel: qsigmoid_forward.3
= control target key start
LH: loop header
LB: loop body
LE: loop exit
PB: predicated region body
PF: predicated region fallthrough
CT: control target
= control target key end

     0   :  { %7 = vsyncpa [#allocation3], 0  ;;  %s175_s12 = smov [#allocation2]   ;;  %s212_s0 = inlined_call_operand.vmem [shape: f32[8], index: 0, kind: input, shape index: {}]   ;;  %s213_s1 = inlined_call_operand.vmem [shape: f32[1,2048], index: 1, kind: input, shape index: {}]   ;;  %s214_s2 = inlined_call_operand.vmem [shape: f32[1,2048], index: 2, kind: output, shape index: {}]  }
   0x1   :  { %s13_s11 = sshll.u32 %s212_s0, 4  ;;  %s14_s11 = int_to_ptr.vmem [resolvable:$true] %s13_s11 }
   0x2   :  { %16 = dma.vmem_to_smem %s14_s11, 16, %s175_s12, [#allocation3]  }
   0x3   :  { %173 = dma.done.wait [#allocation3], 16  }
   0x4   :  { %174 = vsyncadd [#allocation3], 4294967280 }
   0x5   :  { %23 = sfence }
   0x6   :  { %s24_s13 = sld [smem:[#allocation2]]  ;;  %v32_v0 = vld [vmem:[%s213_s1] sm:$0xff]  ;;  %v33_v1 = vld [vmem:[%s213_s1 + $0x8] sm:$0xff] }
   0x7   :  { %s113_s14 = sld [smem:[#allocation2 + $0x1]] }
   0x8   :  { %s114_s0 = sld [smem:[#allocation2 + $0x2]] }
   0x9   :  { %s115_s19 = sld [smem:[#allocation2 + $0x3]] }
   0xa   :  { %s200_s1 = sld [smem:[#allocation2 + $0x4]] }
   0xb   :  { %s202_s20 = sld [smem:[#allocation2 + $0x5]] }
   0xc   :  { %v34_v2 = vstv %s24_s13  ;;  %s118_s21 = sld [smem:[#allocation2 + $0x6]] }
   0xd   :  { %v35_v3 = vmul.f32 %v34_v2, %v32_v0  ;;  %v37_v4 = vstv %s113_s14  ;;  %v36_v5 = vmul.f32 %v34_v2, %v33_v1  ;;  %s119_s22 = sld [smem:[#allocation2 + $0x7]] }
   0xe   :  { %v46_v23 = vstv %s114_s0 }
   0xf   :  { %v38_v6 = vadd.f32 %v37_v4, %v35_v3  ;;  %v39_v7 = vadd.f32 %v37_v4, %v36_v5  ;;  %v49_v26 = vstv %s115_s19 }
  0x10   :  { %v88_v53 = vstv %s200_s1 }
  0x11   :  { %v40_v8 = vmax.f32 %v38_v6, 0.0  ;;  %v41_v9 = vmax.f32 %v39_v7, 0.0  ;;  %v91_v57 = vstv %s202_s20 }
  0x13   :  { %v42_v10 = vmin.f32 %v40_v8, 255.0  ;;  %v43_v11 = vmin.f32 %v41_v9, 255.0 }
  0x15   :  { %v122_v12 = vcvt.f32.s32 %v42_v10  ;;  %v120_v13 = vand.u32 2147483647, %v42_v10  ;;  %v130_v14 = vcvt.f32.s32 %v43_v11  ;;  %v125_v16 = vand.u32 2147483648, %v42_v10 }
  0x16   :  { %v128_v17 = vand.u32 2147483647, %v43_v11  ;;  %v133_v19 = vand.u32 2147483648, %v43_v11 }
  0x17   :  { %v123_v15 = vcvt.s32.f32 %v122_v12  ;;  %v131_v18 = vcvt.s32.f32 %v130_v14  ;;  %vm121_vm0 = vcmp.lt.f32.partialorder %v120_v13, 8388608.0 }
  0x18   :  { %vm129_vm1 = vcmp.lt.f32.partialorder %v128_v17, 8388608.0 }
  0x19   :  { %v124_v20 = vand.u32 2147483647, %v123_v15  ;;  %v132_v21 = vand.u32 2147483647, %v131_v18  ;;  %v100_v15 = vstv %s118_s21  ;;  %v103_v18 = vstv %s119_s22 }
  0x1b   :  { %v126_v22 = vor.u32 %v125_v16, %v124_v20  ;;  %v134_v24 = vor.u32 %v133_v19, %v132_v21 }
  0x1d   :  { %v127_v25 = vsel %vm121_vm0, %v126_v22, %v42_v10  ;;  %v135_v28 = vsel %vm129_vm1, %v134_v24, %v43_v11 }
  0x1e   :  { %v47_v27 = vmul.f32 %v127_v25, %v46_v23  ;;  %v48_v29 = vmul.f32 %v135_v28, %v46_v23 }
  0x20   :  { %v50_v30 = vsub.f32 %v49_v26, %v47_v27  ;;  %v51_v31 = vsub.f32 %v49_v26, %v48_v29 }
  0x22   :  { %v52_v32 = vmul.f32 1.442695, %v50_v30  ;;  %v54_v33 = vmul.f32 1.442695, %v51_v31 }
  0x24   :  { %153 = vpow2.f32 %v52_v32 }
  0x25   :  { %155 = vpow2.f32 %v54_v33 }
  0x2a   :  { %v154_v34 = vpop.eup %153 }
  0x2b   :  { %v156_v35 = vpop.eup %155  ;;  %v56_v36 = vadd.f32 1.0, %v154_v34 }
  0x2c   :  { %v57_v37 = vadd.f32 1.0, %v156_v35 }
  0x2d   :  { %157 = vrcp.f32 %v56_v36  ;;  %vm63_vm2 = vweird.f32 %v56_v36  ;;  %v69_v41 = vand.u32 2147483648, %v56_v36  ;;  %v67_v44 = vand.u32 2147483647, %v56_v36 }
  0x2e   :  { %159 = vrcp.f32 %v57_v37  ;;  %v84_v45 = vand.u32 2147483648, %v57_v37  ;;  %vm78_vm4 = vweird.f32 %v57_v37  ;;  %v82_v47 = vand.u32 2147483647, %v57_v37 }
  0x2f   :  { %v70_v49 = vor.u32 1.1754944e-38, %v69_v41  ;;  %vm68_vm7 = vcmp.eq.f32.partialorder %v67_v44, 8.507059e+37 }
  0x30   :  { %v85_v52 = vor.u32 1.1754944e-38, %v84_v45  ;;  %vm83_vm9 = vcmp.eq.f32.partialorder %v82_v47, 8.507059e+37 }
  0x33   :  { %v158_v38 = vpop.eup %157 }
  0x34   :  { %v160_v39 = vpop.eup %159  ;;  %v59_v40 = vmul.f32 %v158_v38, %v56_v36  ;;  %vm64_vm3 = vweird.f32 %v158_v38 }
  0x35   :  { %v74_v42 = vmul.f32 %v160_v39, %v57_v37  ;;  %vm79_vm5 = vweird.f32 %v160_v39  ;;  %vm65_vm6 = vmor %vm63_vm2, %vm64_vm3 }
  0x36   :  { %v60_v43 = vsub.f32 1.0, %v59_v40  ;;  %vm80_vm8 = vmor %vm78_vm4, %vm79_vm5 }
  0x37   :  { %v75_v46 = vsub.f32 1.0, %v74_v42 }
  0x38   :  { %v61_v48 = vmul.f32 %v158_v38, %v60_v43 }
  0x39   :  { %v76_v50 = vmul.f32 %v160_v39, %v75_v46 }
  0x3a   :  { %v62_v51 = vadd.f32 %v158_v38, %v61_v48 }
  0x3b   :  { %v77_v54 = vadd.f32 %v160_v39, %v76_v50 }
  0x3c   :  { %v66_v55 = vsel %vm65_vm6, %v158_v38, %v62_v51 }
  0x3d   :  { %v71_v56 = vsel %vm68_vm7, %v70_v49, %v66_v55  ;;  %v81_v58 = vsel %vm80_vm8, %v160_v39, %v77_v54 }
  0x3e   :  { %v89_v59 = vmul.f32 %v88_v53, %v71_v56  ;;  %v86_v60 = vsel %vm83_vm9, %v85_v52, %v81_v58 }
  0x3f   :  { %v90_v61 = vmul.f32 %v88_v53, %v86_v60 }
  0x40   :  { %v92_v62 = vadd.f32 %v91_v57, %v89_v59 }
  0x41   :  { %v93_v63 = vadd.f32 %v91_v57, %v90_v61 }
  0x42   :  { %v94_v0 = vmax.f32 %v92_v62, 0.0 }
  0x43   :  { %v95_v1 = vmax.f32 %v93_v63, 0.0 }
  0x44   :  { %v96_v2 = vmin.f32 %v94_v0, 255.0 }
  0x45   :  { %v97_v3 = vmin.f32 %v95_v1, 255.0 }
  0x46   :  { %v138_v4 = vcvt.f32.s32 %v96_v2  ;;  %v136_v5 = vand.u32 2147483647, %v96_v2  ;;  %v141_v8 = vand.u32 2147483648, %v96_v2 }
  0x47   :  { %v146_v6 = vcvt.f32.s32 %v97_v3  ;;  %v144_v9 = vand.u32 2147483647, %v97_v3  ;;  %v149_v11 = vand.u32 2147483648, %v97_v3 }
  0x48   :  { %v139_v7 = vcvt.s32.f32 %v138_v4  ;;  %vm137_vm10 = vcmp.lt.f32.partialorder %v136_v5, 8388608.0 }
  0x49   :  { %v147_v10 = vcvt.s32.f32 %v146_v6  ;;  %vm145_vm11 = vcmp.lt.f32.partialorder %v144_v9, 8388608.0 }
  0x4a   :  { %v140_v12 = vand.u32 2147483647, %v139_v7 }
  0x4b   :  { %v148_v13 = vand.u32 2147483647, %v147_v10 }
  0x4c   :  { %v142_v14 = vor.u32 %v141_v8, %v140_v12 }
  0x4d   :  { %v150_v16 = vor.u32 %v149_v11, %v148_v13 }
  0x4e   :  { %v143_v17 = vsel %vm137_vm10, %v142_v14, %v96_v2 }
  0x4f   :  { %v101_v19 = vmul.f32 %v143_v17, %v100_v15  ;;  %v151_v20 = vsel %vm145_vm11, %v150_v16, %v97_v3 }
  0x50   :  { %v102_v21 = vmul.f32 %v151_v20, %v100_v15 }
  0x51   :  { %v104_v22 = vsub.f32 %v101_v19, %v103_v18 }
  0x52   :  { %v105_v23 = vsub.f32 %v102_v21, %v103_v18 }
  0x53   :  { %106 = vst [vmem:[%s214_s2] sm:$0xff] %v104_v22 }
  0x54   :  { %107 = vst [vmem:[%s214_s2 + $0x8] sm:$0xff] %v105_v23 }
  0x55   :  { %112 = vsyncpa [#allocation3], 1 }

</bundles_post_ra>
